<compile_context>
chip_gen: v7x
topology: tpu7x:2x2x1
jax: 0.10.0
libtpu: 0.0.40
codegen_flags: <defaults>
</compile_context>

<pallas_src>
import functools

import jax
import jax.numpy as jnp
import numpy as np
from jax import lax
from jax.experimental import pallas as pl
from jax.experimental.pallas import tpu as pltpu


def _random_mask_kernel(seed_ref, x_ref, o_ref, *, threshold, fill_value, lane_w):
    """o = where(hash(global_idx, seed) < threshold, fill_value, x)."""
    block_rows = x_ref.shape[0]
    pid = pl.program_id(0)

    # Global element index of every element in this tile.  Because the index is
    # global, each tile automatically sees independent random bits (no
    # replicated mask pattern across tiles) and the result is identical for any
    # tiling / core split.
    row = lax.broadcasted_iota(jnp.int32, x_ref.shape, 0) + pid * block_rows
    col = lax.broadcasted_iota(jnp.int32, x_ref.shape, 1)
    idx = row.astype(jnp.uint32) * jnp.uint32(lane_w) + col.astype(jnp.uint32)

    # Stateless counter-based hash (lowbias32 finalizer) -> uniform uint32 bits.
    seed = seed_ref[0].astype(jnp.uint32)
    h = idx * jnp.uint32(0x9E3779B9) + seed * jnp.uint32(0x85EBCA6B)
    h = h ^ (h >> 16)
    h = h * jnp.uint32(0x7FEB352D)
    h = h ^ (h >> 15)
    h = h * jnp.uint32(0x846CA68B)
    h = h ^ (h >> 16)

    # Integer-space Bernoulli(p): P(h < threshold) == threshold / 2^32.
    mask = h < jnp.uint32(threshold)

    x = x_ref[...]
    o_ref[...] = jnp.where(mask, jnp.full_like(x, fill_value), x)


def random_mask(x, seed, p=0.1, fill_value=-np.inf, *, lane_w=1024, tile_rows=512):
    """Functional equivalent of RandomMask(p).forward(x, value=fill_value)."""
    if p < 0 or p > 1:
        raise ValueError(
            'mask probability has to be between 0 and 1, but got {}'.format(p))
    if not jnp.issubdtype(x.dtype, jnp.floating):
        # TODO(synk): -inf fill is only meaningful for floating dtypes.
        raise TypeError('random_mask only supports floating-point inputs.')

    orig_shape = x.shape
    n = int(x.size)

    # Flatten to a lane-dense 2-D slab (rows, lane_w).  Pad only the ragged
    # tail (at most lane_w - 1 elements); no dtype round-trip.
    flat = x.reshape(-1)
    rows = pl.cdiv(n, lane_w)
    padded = rows * lane_w
    if padded != n:
        flat = jnp.pad(flat, (0, padded - n))
    x2d = flat.reshape(rows, lane_w)

    # Block rows: 512 (multiple of 8/16 sublanes) when the slab is big enough,
    # otherwise the full row extent (always legal as a full-dim block).
    # 512 x 1024 f32 = 2 MiB/buffer -> in+out double-buffered = 8 MiB, which
    # fits the scoped-VMEM defaults on v5e (16 MiB) and v6e/v7x (32 MiB).
    block_rows = tile_rows if rows >= tile_rows else rows
    grid = (pl.cdiv(rows, block_rows),)

    # Bernoulli threshold in integer space.
    threshold = min(int(round(float(p) * 4294967296.0)), 4294967295)

    seed_arr = jnp.asarray([seed], dtype=jnp.int32)

    kernel = functools.partial(
        _random_mask_kernel,
        threshold=threshold,
        fill_value=float(fill_value),
        lane_w=lane_w,
    )

    out2d = pl.pallas_call(
        kernel,
        grid=grid,
        out_shape=jax.ShapeDtypeStruct(x2d.shape, x2d.dtype),
        in_specs=[
            pl.BlockSpec(memory_space=pltpu.MemorySpace.SMEM),   # seed scalar
            pl.BlockSpec((block_rows, lane_w), lambda i: (i, 0)),
        ],
        out_specs=pl.BlockSpec((block_rows, lane_w), lambda i: (i, 0)),
        input_output_aliases={1: 0},  # elementwise overwrite -> reuse buffer
        compiler_params=pltpu.CompilerParams(
            dimension_semantics=("parallel",),
        ),
    )(seed_arr, x2d)

    if padded != n:
        return out2d.reshape(-1)[:n].reshape(orig_shape)
    return out2d.reshape(orig_shape)


if __name__ == "__main__":
    key = jax.random.PRNGKey(0)
    # NCHW activation consistent with what the module would see.
    x = jax.random.normal(key, (2, 4, 16, 16), dtype=jnp.float32)

    p = 0.1
    out = random_mask(x, seed=42, p=p)
    out = jax.block_until_ready(out)

    # Sanity checks: unmasked elements unchanged, masked elements are -inf,
    # masked fraction roughly p.
    out_np = np.asarray(out)
    x_np = np.asarray(x)
    masked = np.isneginf(out_np)
    assert out_np.shape == x_np.shape
    assert np.allclose(out_np[~masked], x_np[~masked])
    frac = masked.mean()
    assert 0.01 < frac < 0.3, f"unexpected mask fraction {frac}"

    print("KERNEL_OK")
</pallas_src>

<mosaic_0001>
module attributes {stable_mosaic.version = 11 : i64} {
  func.func @_random_mask_kernel(%arg0: i32, %arg1: memref<1xi32, #tpu.memory_space<smem>>, %arg2: memref<2x1024xf32, #tpu.memory_space<vmem>>, %arg3: memref<2x1024xf32, #tpu.memory_space<vmem>>) attributes {dimension_semantics = [#tpu.dimension_semantics<parallel>], iteration_bounds = array<i64: 1>, scalar_prefetch = 0 : i64, scratch_operands = 0 : i64, tpu.core_type = #tpu.core_type<tc>, window_params = [{transform_indices = @transform_0, window_bounds = array<i64: 1>}, {transform_indices = @transform_1, window_bounds = array<i64: 2, 1024>}, {transform_indices = @transform_2, window_bounds = array<i64: 2, 1024>}]} {
    %0 = tpu.iota {dimensions = array<i32: 0>} : vector<2x1024xi32>
    %c2_i32 = arith.constant 2 : i32
    %1 = arith.muli %arg0, %c2_i32 : i32
    %2 = vector.broadcast %1 : i32 to vector<2x1024xi32>
    %3 = arith.addi %0, %2 : vector<2x1024xi32>
    %4 = tpu.iota {dimensions = array<i32: 1>} : vector<2x1024xi32>
    %c1024_i32 = arith.constant 1024 : i32
    %5 = vector.broadcast %c1024_i32 : i32 to vector<2x1024xi32>
    %6 = arith.muli %3, %5 : vector<2x1024xi32>
    %7 = arith.addi %6, %4 : vector<2x1024xi32>
    %c0 = arith.constant 0 : index
    %8 = memref.load %arg1[%c0] : memref<1xi32, #tpu.memory_space<smem>>
    %c-1640531527_i32 = arith.constant -1640531527 : i32
    %9 = vector.broadcast %c-1640531527_i32 : i32 to vector<2x1024xi32>
    %10 = arith.muli %7, %9 : vector<2x1024xi32>
    %c-2048144789_i32 = arith.constant -2048144789 : i32
    %11 = arith.muli %8, %c-2048144789_i32 : i32
    %12 = vector.broadcast %11 : i32 to vector<2x1024xi32>
    %13 = arith.addi %10, %12 : vector<2x1024xi32>
    %c16_i32 = arith.constant 16 : i32
    %14 = vector.broadcast %c16_i32 : i32 to vector<2x1024xi32>
    %15 = arith.shrui %13, %14 : vector<2x1024xi32>
    %16 = arith.xori %13, %15 : vector<2x1024xi32>
    %c2146121005_i32 = arith.constant 2146121005 : i32
    %17 = vector.broadcast %c2146121005_i32 : i32 to vector<2x1024xi32>
    %18 = arith.muli %16, %17 : vector<2x1024xi32>
    %c15_i32 = arith.constant 15 : i32
    %19 = vector.broadcast %c15_i32 : i32 to vector<2x1024xi32>
    %20 = arith.shrui %18, %19 : vector<2x1024xi32>
    %21 = arith.xori %18, %20 : vector<2x1024xi32>
    %c-2073254261_i32 = arith.constant -2073254261 : i32
    %22 = vector.broadcast %c-2073254261_i32 : i32 to vector<2x1024xi32>
    %23 = arith.muli %21, %22 : vector<2x1024xi32>
    %c16_i32_0 = arith.constant 16 : i32
    %24 = vector.broadcast %c16_i32_0 : i32 to vector<2x1024xi32>
    %25 = arith.shrui %23, %24 : vector<2x1024xi32>
    %26 = arith.xori %23, %25 : vector<2x1024xi32>
    %c429496730_i32 = arith.constant 429496730 : i32
    %27 = vector.broadcast %c429496730_i32 : i32 to vector<2x1024xi32>
    %28 = arith.cmpi ult, %26, %27 : vector<2x1024xi32>
    %c0_1 = arith.constant 0 : index
    %c0_2 = arith.constant 0 : index
    %29 = vector.load %arg2[%c0_1, %c0_2] : memref<2x1024xf32, #tpu.memory_space<vmem>>, vector<2x1024xf32>
    %cst = arith.constant 0xFF800000 : f32
    %30 = vector.broadcast %cst : f32 to vector<2x1024xf32>
    %31 = arith.select %28, %30, %29 : vector<2x1024xi1>, vector<2x1024xf32>
    %c0_3 = arith.constant 0 : index
    %c0_4 = arith.constant 0 : index
    %32 = vector.load %arg3[%c0_3, %c0_4] : memref<2x1024xf32, #tpu.memory_space<vmem>>, vector<2x1024xf32>
    tpu.vector_store %arg3[%c0_3, %c0_4], %31 {strides = array<i32>} : memref<2x1024xf32, #tpu.memory_space<vmem>>, vector<2x1024xf32>,
    return
  }
  func.func @transform_0(%arg0: i32) -> i32 {
    %c0_i32 = arith.constant 0 : i32
    %c0_i32_0 = arith.constant 0 : i32
    return %c0_i32 : i32
  }
  func.func @transform_1(%arg0: i32) -> (i32, i32) {
    %c0_i32 = arith.constant 0 : i32
    %c0_i32_0 = arith.constant 0 : i32
    return %arg0, %c0_i32 : i32, i32
  }
  func.func @transform_2(%arg0: i32) -> (i32, i32) {
    %c0_i32 = arith.constant 0 : i32
    %c0_i32_0 = arith.constant 0 : i32
    return %arg0, %c0_i32 : i32, i32
  }
}

</mosaic_0001>

<bundles_post_ra>
// kernel: tpu_custom_call.1
= control target key start
LH: loop header
LB: loop body
LE: loop exit
PB: predicated region body
PF: predicated region fallthrough
CT: control target
= control target key end

     0   :  { %8 = vsyncpa [#allocation4], 0  ;;  %s386_s0 = inlined_call_operand.<no memory space> [shape: s32[1], index: 0, kind: input, shape index: {}]   ;;  %s387_s1 = inlined_call_operand.hbm [shape: f32[2,1024], index: 1, kind: input, shape index: {}, may-alias: {1,2}]   ;;  %s388_s2 = inlined_call_operand.hbm [shape: f32[2,1024], index: 2, kind: output, shape index: {}, may-alias: {1,2}]  }
   0x1   :  { %9 = vsyncpa [#allocation5], 0  ;;  %s307_s9 = smov [#allocation3]   ;;  %s259_s13 = scalar_lea.hbm %s387_s1, 256 }
   0x2   :  { %s18_s10 = sshll.u32 %s307_s9, 4  ;;  %p260_p0 = scmp.ne.s32.totalorder %s387_s1, %s259_s13  ;;  %s19_s10 = int_to_ptr.vmem [resolvable:$true] %s18_s10 }
   0x3   :  { %p263_p1 = scmp.lt.u32.totalorder %s259_s13, %s387_s1 }
   0x5   :  { %p265_p2 = pnand %p263_p1, %p260_p0 }
   0x7   :  { %268 = shalt.err (!%p265_p2)
}
   0x8   :  { %s269_s18 = scalar_lea.vmem %s19_s10, 256  ;;  %p274_p4 = scmp.lt.s32.totalorder %s19_s10, %s19_s10 }
   0x9   :  { %p270_p3 = scmp.ne.s32.totalorder %s19_s10, %s269_s18  ;;  %p275_p5 = scmp.lt.s32.totalorder %s269_s18, %s269_s18 }
   0xb   :  { %p276_p6 = por %p275_p5, %p274_p4 }
   0xd   :  { %p277_p7 = pnand %p276_p6, %p270_p3 }
   0xf   :  { %280 = shalt.err (!%p277_p7)
}
  0x10   :  { %21 = dma.hbm_to_vmem [thread:$0]  %s387_s1, 256, %s19_s10, [#allocation4]  }
  0x11   :  { %303 = dma.done.wait [#allocation4], 256  }
  0x12   :  { %304 = vsyncadd [#allocation4], 4294967040  ;;  %v25_v0 = vlaneseq  ;;  %s57_s23 = smul.u32 2246822507, %s386_s0  ;;  %v308_v1 = vmov 1983009808  }
  0x13   :  { %v145_v2 = vunpack.c.l.s4 %v308_v1  ;;  %v139_v19 = vld [vmem:[#allocation3] sm:$0xff]  ;;  %v342_v24 = vld [vmem:[#allocation3 + $0x8] sm:$0xff]  ;;  %s309_s0 = smov [#allocation6]  }
  0x14   :  { %v26_v3 = vshrl.u32 %v25_v0, 7  ;;  %v31_v4 = vand.u32 127, %v25_v0  ;;  %v58_v5 = vstv %s57_s23  ;;  %v143_v27 = vcombine.high %v139_v19, %v139_v19  ;;  %s245_s1 = sshll.u32 %s309_s0, 4  ;;  %s246_s1 = int_to_ptr.vmem [resolvable:$true] %s245_s1 }
  0x15   :  { %v146_v6 = vunpack.c.0.s8 %v145_v2  ;;  %v160_v32 = vcombine.high %v342_v24, %v342_v24  ;;  %s281_s24 = scalar_lea.vmem %s246_s1, 256  ;;  %p286_p9 = scmp.lt.s32.totalorder %s246_s1, %s246_s1 }
  0x16   :  { %v32_v7 = vadd.s32 128, %v31_v4  ;;  %v33_v8 = vadd.s32 256, %v31_v4  ;;  %v34_v9 = vadd.s32 384, %v31_v4  ;;  %v39_v10 = vmul.u32 1024, %v26_v3  ;;  %p282_p8 = scmp.ne.s32.totalorder %s246_s1, %s281_s24  ;;  %p287_p10 = scmp.lt.s32.totalorder %s281_s24, %s281_s24 }
  0x17   :  { %v340_v11 = vsub.s32 %v146_v6, %v26_v3  ;;  %v35_v12 = vadd.s32 512, %v31_v4  ;;  %v36_v13 = vadd.s32 640, %v31_v4  ;;  %v37_v14 = vadd.s32 768, %v31_v4 }
  0x18   :  { %v40_v15 = vadd.s32 %v39_v10, %v31_v4  ;;  %v41_v16 = vadd.s32 %v39_v10, %v32_v7  ;;  %v42_v17 = vadd.s32 %v39_v10, %v33_v8  ;;  %v43_v18 = vadd.s32 %v39_v10, %v34_v9  ;;  %p288_p11 = por %p287_p10, %p286_p9 }
  0x19   :  { %v38_v20 = vadd.s32 896, %v31_v4  ;;  %v44_v21 = vadd.s32 %v39_v10, %v35_v12  ;;  %v45_v22 = vadd.s32 %v39_v10, %v36_v13  ;;  %v46_v23 = vadd.s32 %v39_v10, %v37_v14 }
  0x1a   :  { %v49_v25 = vmul.u32 2654435769, %v40_v15  ;;  %v50_v26 = vmul.u32 2654435769, %v41_v16  ;;  %v345_v28 = vrot.slane %v139_v19, %v340_v11  ;;  %v350_v35 = vrot.slane %v143_v27, %v340_v11  ;;  %p289_p12 = pnand %p288_p11, %p282_p8 }
  0x1b   :  { %v51_v29 = vmul.u32 2654435769, %v42_v17  ;;  %v52_v30 = vmul.u32 2654435769, %v43_v18  ;;  %v47_v31 = vadd.s32 %v39_v10, %v38_v20 }
  0x1c   :  { %v59_v33 = vadd.s32 %v58_v5, %v49_v25  ;;  %v60_v34 = vadd.s32 %v58_v5, %v50_v26  ;;  %v158_v36 = vcombine.high %v345_v28, %v345_v28  ;;  %v53_v39 = vmul.u32 2654435769, %v44_v21 }
  0x1d   :  { %v61_v37 = vadd.s32 %v58_v5, %v51_v29  ;;  %v62_v38 = vadd.s32 %v58_v5, %v52_v30  ;;  %v54_v40 = vmul.u32 2654435769, %v45_v22  ;;  %v159_v43 = vcombine.high %v350_v35, %v350_v35 }
  0x1e   :  { %v67_v41 = vshrl.u32 %v59_v33, 16  ;;  %v68_v42 = vshrl.u32 %v60_v34, 16  ;;  %v55_v44 = vmul.u32 2654435769, %v46_v23  ;;  %v56_v47 = vmul.u32 2654435769, %v47_v31 }
  0x1f   :  { %v69_v45 = vshrl.u32 %v61_v37, 16  ;;  %v70_v46 = vshrl.u32 %v62_v38, 16  ;;  %v63_v48 = vadd.s32 %v58_v5, %v53_v39  ;;  %v64_v51 = vadd.s32 %v58_v5, %v54_v40 }
  0x20   :  { %v75_v49 = vxor.u32 %v67_v41, %v59_v33  ;;  %v76_v50 = vxor.u32 %v68_v42, %v60_v34  ;;  %v65_v52 = vadd.s32 %v58_v5, %v55_v44  ;;  %v66_v55 = vadd.s32 %v58_v5, %v56_v47 }
  0x21   :  { %v77_v53 = vxor.u32 %v69_v45, %v61_v37  ;;  %v78_v54 = vxor.u32 %v70_v46, %v62_v38  ;;  %v71_v56 = vshrl.u32 %v63_v48, 16  ;;  %v72_v59 = vshrl.u32 %v64_v51, 16 }
  0x22   :  { %v83_v57 = vmul.u32 2146121005, %v75_v49  ;;  %v84_v58 = vmul.u32 2146121005, %v76_v50  ;;  %v73_v60 = vshrl.u32 %v65_v52, 16  ;;  %v74_v63 = vshrl.u32 %v66_v55, 16 }
  0x23   :  { %v85_v61 = vmul.u32 2146121005, %v77_v53  ;;  %v86_v62 = vmul.u32 2146121005, %v78_v54  ;;  %v79_v0 = vxor.u32 %v71_v56, %v63_v48  ;;  %v80_v3 = vxor.u32 %v72_v59, %v64_v51 }
  0x24   :  { %v91_v1 = vshrl.u32 %v83_v57, 15  ;;  %v92_v2 = vshrl.u32 %v84_v58, 15  ;;  %v81_v4 = vxor.u32 %v73_v60, %v65_v52  ;;  %v82_v8 = vxor.u32 %v74_v63, %v66_v55 }
  0x25   :  { %v93_v6 = vshrl.u32 %v85_v61, 15  ;;  %v94_v7 = vshrl.u32 %v86_v62, 15  ;;  %v87_v9 = vmul.u32 2146121005, %v79_v0  ;;  %v88_v5 = vmul.u32 2146121005, %v80_v3 }
  0x26   :  { %v99_v10 = vxor.u32 %v91_v1, %v83_v57  ;;  %v100_v12 = vxor.u32 %v92_v2, %v84_v58  ;;  %v89_v13 = vmul.u32 2146121005, %v81_v4  ;;  %v90_v16 = vmul.u32 2146121005, %v82_v8 }
  0x27   :  { %v101_v14 = vxor.u32 %v93_v6, %v85_v61  ;;  %v102_v15 = vxor.u32 %v94_v7, %v86_v62  ;;  %v95_v17 = vshrl.u32 %v87_v9, 15  ;;  %v96_v20 = vshrl.u32 %v88_v5, 15 }
  0x28   :  { %v107_v18 = vmul.u32 2221713035, %v99_v10  ;;  %v108_v19 = vmul.u32 2221713035, %v100_v12  ;;  %v97_v21 = vshrl.u32 %v89_v13, 15  ;;  %v98_v25 = vshrl.u32 %v90_v16, 15 }
  0x29   :  { %v109_v22 = vmul.u32 2221713035, %v101_v14  ;;  %v110_v23 = vmul.u32 2221713035, %v102_v15  ;;  %v103_v26 = vxor.u32 %v95_v17, %v87_v9  ;;  %v104_v30 = vxor.u32 %v96_v20, %v88_v5 }
  0x2a   :  { %v115_v27 = vshrl.u32 %v107_v18, 16  ;;  %v116_v29 = vshrl.u32 %v108_v19, 16  ;;  %v105_v31 = vxor.u32 %v97_v21, %v89_v13  ;;  %v106_v37 = vxor.u32 %v98_v25, %v90_v16 }
  0x2b   :  { %v117_v33 = vshrl.u32 %v109_v22, 16  ;;  %v118_v34 = vshrl.u32 %v110_v23, 16  ;;  %v111_v38 = vmul.u32 2221713035, %v103_v26  ;;  %v112_v41 = vmul.u32 2221713035, %v104_v30 }
  0x2c   :  { %v123_v39 = vxor.u32 %v115_v27, %v107_v18  ;;  %v124_v40 = vxor.u32 %v116_v29, %v108_v19  ;;  %v113_v42 = vmul.u32 2221713035, %v105_v31  ;;  %v114_v46 = vmul.u32 2221713035, %v106_v37 }
  0x2d   :  { %v125_v44 = vxor.u32 %v117_v33, %v109_v22  ;;  %v126_v45 = vxor.u32 %v118_v34, %v110_v23  ;;  %v119_v47 = vshrl.u32 %v111_v38, 16  ;;  %v120_v48 = vshrl.u32 %v112_v41, 16 }
  0x2e   :  { %vm131_vm0 = vcmp.lt.u32.totalorder %v123_v39, 429496730  ;;  %vm132_vm1 = vcmp.lt.u32.totalorder %v124_v40, 429496730  ;;  %v121_v49 = vshrl.u32 %v113_v42, 16  ;;  %v122_v55 = vshrl.u32 %v114_v46, 16 }
  0x2f   :  { %vm133_vm2 = vcmp.lt.u32.totalorder %v125_v44, 429496730  ;;  %vm134_vm3 = vcmp.lt.u32.totalorder %v126_v45, 429496730  ;;  %v185_v50 = vsel %vm131_vm0, -inf, %v345_v28  ;;  %v186_v51 = vsel %vm132_vm1, -inf, %v158_v36 }
  0x30   :  { %v187_v52 = vsel %vm133_vm2, -inf, %v350_v35  ;;  %v188_v53 = vsel %vm134_vm3, -inf, %v159_v43  ;;  %v201_v54 = vcombine.low %v185_v50, %v186_v51  ;;  %v127_v57 = vxor.u32 %v119_v47, %v111_v38 }
  0x31   :  { %v202_v56 = vcombine.low %v187_v52, %v188_v53  ;;  %v128_v58 = vxor.u32 %v120_v48, %v112_v41  ;;  %v129_v59 = vxor.u32 %v121_v49, %v113_v42  ;;  %v130_v61 = vxor.u32 %v122_v55, %v114_v46 }
  0x32   :  { %v209_v60 = vrot.slane %v201_v54, %v340_v11  ;;  %v167_v62 = vrot.slane %v342_v24, %v340_v11  ;;  %v174_v28 = vrot.slane %v160_v32, %v340_v11  ;;  %vm135_vm4 = vcmp.lt.u32.totalorder %v127_v57, 429496730 }
  0x33   :  { %v216_v35 = vrot.slane %v202_v56, %v340_v11  ;;  %vm136_vm5 = vcmp.lt.u32.totalorder %v128_v58, 429496730  ;;  %vm137_vm6 = vcmp.lt.u32.totalorder %v129_v59, 429496730  ;;  %vm138_vm7 = vcmp.lt.u32.totalorder %v130_v61, 429496730 }
  0x34   :  { %v175_v36 = vcombine.high %v167_v62, %v167_v62  ;;  %v176_v43 = vcombine.high %v174_v28, %v174_v28  ;;  %v189_v63 = vsel %vm135_vm4, -inf, %v167_v62  ;;  %v191_v1 = vsel %vm137_vm6, -inf, %v174_v28 }
  0x35   :  { %v217_v0 = vcombine.low %v209_v60, %v216_v35 }
  0x36   :  { %v190_v2 = vsel %vm136_vm5, -inf, %v175_v36  ;;  %v192_v3 = vsel %vm138_vm7, -inf, %v176_v43 }
  0x37   :  { %237 = vst [vmem:[#allocation6] sm:$0xff] %v217_v0  ;;  %v218_v4 = vcombine.low %v189_v63, %v190_v2  ;;  %v219_v6 = vcombine.low %v191_v1, %v192_v3 }
  0x39   :  { %v226_v24 = vrot.slane %v218_v4, %v340_v11  ;;  %v233_v32 = vrot.slane %v219_v6, %v340_v11 }
  0x3b   :  { %v234_v7 = vcombine.low %v226_v24, %v233_v32 }
  0x3d   :  { %238 = vst [vmem:[#allocation6 + $0x8] sm:$0xff] %v234_v7 }
  0x3e   :  { %292 = shalt.err (!%p289_p12)
}
  0x3f   :  { %s293_s27 = scalar_lea.hbm %s388_s2, 256 }
  0x40   :  { %p294_p13 = scmp.ne.s32.totalorder %s388_s2, %s293_s27  ;;  %p297_p0 = scmp.lt.u32.totalorder %s293_s27, %s388_s2 }
  0x42   :  { %p299_p1 = pnand %p297_p0, %p294_p13 }
  0x44   :  { %302 = shalt.err (!%p299_p1)
}
  0x45   :  { %248 = dma.vmem_to_hbm [thread:$0]  %s246_s1, 256, %s388_s2, [#allocation5]  }
  0x46   :  { %305 = dma.done.wait [#allocation5], 256  }
  0x47   :  { %306 = vsyncadd [#allocation5], 4294967040 }
  0x48   :  { %252 = vsyncpa [#allocation4], 1 }
  0x49   :  { %253 = vsyncpa [#allocation5], 1 }

</bundles_post_ra>
